<compile_context>
chip_gen: v7x
topology: tpu7x:2x2x1
jax: 0.10.0
libtpu: 0.0.40
codegen_flags: <defaults>
</compile_context>

<pallas_src>
import jax
import jax.numpy as jnp
from jax import lax
from jax.experimental import pallas as pl
from jax.experimental.pallas import tpu as pltpu


def _round_up(x, m):
    return ((x + m - 1) // m) * m


def shallow_phi_kernel(z_ref, w_ref, b_ref, o_ref):
    # z_ref: (TM, K), w_ref: (N, K), b_ref: (1, N), o_ref: (TM, N)
    h = lax.dot_general(
        z_ref[...],
        w_ref[...],
        dimension_numbers=(((1,), (1,)), ((), ())),  # contract K with K
        preferred_element_type=jnp.float32,
    )
    h = h + b_ref[...].astype(jnp.float32)            # broadcast bias over rows
    o_ref[...] = jnp.maximum(h, 0.0).astype(o_ref.dtype)


def shallow_phi(z, weight, bias, z_dim, *, tm_cap=4096, vmem_block_budget=8 << 20):
    """Pallas equivalent of relu(nn.Linear(z_dim, hidden_dim)(z))[..., :z_dim].

    z:      (..., z_dim)
    weight: (hidden_dim, z_dim)   (PyTorch nn.Linear layout)
    bias:   (hidden_dim,)
    """
    leading = z.shape[:-1]
    K = z.shape[-1]
    M = 1
    for d in leading:
        M *= d

    # Fuse the output slice into the parameters (exact: ReLU is elementwise).
    w = weight[:z_dim, :]                  # (N, K), N = z_dim
    b = bias[:z_dim].reshape(1, z_dim)     # (1, N)
    N = z_dim

    z2 = z.reshape(M, K)                   # row-major collapse of leading dims

    # Row-tile size: multiple of 8 (f32 sublane), capped by a VMEM budget that
    # covers double-buffered input + output blocks, clamped for tiny M.
    bytes_per_row = (K + N) * 4 * 2        # in + out block rows, double-buffered
    TM = min(tm_cap, max(8, vmem_block_budget // bytes_per_row))
    TM = max(8, (TM // 8) * 8)
    TM = min(TM, _round_up(M, 8))

    out = pl.pallas_call(
        shallow_phi_kernel,
        out_shape=jax.ShapeDtypeStruct((M, N), z.dtype),
        grid=(pl.cdiv(M, TM),),
        in_specs=[
            pl.BlockSpec((TM, K), lambda i: (i, 0)),   # streamed activations
            pl.BlockSpec((N, K), lambda i: (0, 0)),    # resident weight
            pl.BlockSpec((1, N), lambda i: (0, 0)),    # resident bias
        ],
        out_specs=pl.BlockSpec((TM, N), lambda i: (i, 0)),
        compiler_params=pltpu.CompilerParams(
            dimension_semantics=("parallel",),
        ),
    )(z2, w, b)

    return out.reshape(*leading, N)


def reference_shallow_phi(z, weight, bias, z_dim):
    h = jnp.einsum("...k,nk->...n", z, weight) + bias
    return jnp.maximum(h, 0.0)[..., :z_dim]


if __name__ == "__main__":
    z_dim = 32
    hidden_dim = 64

    key = jax.random.PRNGKey(0)
    k_w, k_b, k_z1, k_z2, k_z3 = jax.random.split(key, 5)

    # Deterministic PyTorch-style init: uniform(-1/sqrt(fan_in), 1/sqrt(fan_in))
    bound = 1.0 / (z_dim ** 0.5)
    weight = jax.random.uniform(k_w, (hidden_dim, z_dim), jnp.float32, -bound, bound)
    bias = jax.random.uniform(k_b, (hidden_dim,), jnp.float32, -bound, bound)

    # Case 1: M = 2*8 = 16 (single full block)
    z1 = jax.random.normal(k_z1, (2, 8, z_dim), jnp.float32)
    out1 = jax.block_until_ready(shallow_phi(z1, weight, bias, z_dim))
    ref1 = reference_shallow_phi(z1, weight, bias, z_dim)
    assert out1.shape == (2, 8, z_dim)
    assert jnp.allclose(out1, ref1, atol=1e-5, rtol=1e-5)

    # Case 2: M = 3*5 = 15 (single partial block, no padding copies)
    z2 = jax.random.normal(k_z2, (3, 5, z_dim), jnp.float32)
    out2 = jax.block_until_ready(shallow_phi(z2, weight, bias, z_dim))
    ref2 = reference_shallow_phi(z2, weight, bias, z_dim)
    assert out2.shape == (3, 5, z_dim)
    assert jnp.allclose(out2, ref2, atol=1e-5, rtol=1e-5)

    # Case 3: M = 4*9 = 36 with a small tile cap -> multi-block grid with a
    # partial trailing block (exercises the cdiv/masked-store path).
    z3 = jax.random.normal(k_z3, (4, 9, z_dim), jnp.float32)
    out3 = jax.block_until_ready(shallow_phi(z3, weight, bias, z_dim, tm_cap=16))
    ref3 = reference_shallow_phi(z3, weight, bias, z_dim)
    assert out3.shape == (4, 9, z_dim)
    assert jnp.allclose(out3, ref3, atol=1e-5, rtol=1e-5)

    print("KERNEL_OK")
</pallas_src>

<mosaic_0001>
module attributes {stable_mosaic.version = 11 : i64} {
  func.func @shallow_phi_kernel(%arg0: i32, %arg1: memref<16x32xf32, #tpu.memory_space<vmem>>, %arg2: memref<32x32xf32, #tpu.memory_space<vmem>>, %arg3: memref<1x32xf32, #tpu.memory_space<vmem>>, %arg4: memref<16x32xf32, #tpu.memory_space<vmem>>) attributes {dimension_semantics = [#tpu.dimension_semantics<parallel>], iteration_bounds = array<i64: 1>, scalar_prefetch = 0 : i64, scratch_operands = 0 : i64, tpu.core_type = #tpu.core_type<tc>, window_params = [{transform_indices = @transform_0, window_bounds = array<i64: 16, 32>}, {pipeline_mode = #tpu.pipeline_mode<synchronous>, transform_indices = @transform_1, window_bounds = array<i64: 32, 32>}, {pipeline_mode = #tpu.pipeline_mode<synchronous>, transform_indices = @transform_2, window_bounds = array<i64: 1, 32>}, {transform_indices = @transform_3, window_bounds = array<i64: 16, 32>}]} {
    %c0 = arith.constant 0 : index
    %c0_0 = arith.constant 0 : index
    %0 = vector.load %arg1[%c0, %c0_0] : memref<16x32xf32, #tpu.memory_space<vmem>>, vector<16x32xf32>
    %c0_1 = arith.constant 0 : index
    %c0_2 = arith.constant 0 : index
    %1 = vector.load %arg2[%c0_1, %c0_2] : memref<32x32xf32, #tpu.memory_space<vmem>>, vector<32x32xf32>
    %cst = arith.constant dense<0.000000e+00> : vector<16x32xf32>
    %2 = tpu.matmul %0, %1, %cst {dimension_numbers = #tpu.dot_dimension_numbers<[1], [1], [0], [0], [0, 0, 1, 0], [], []>} : vector<16x32xf32>, vector<32x32xf32>, vector<16x32xf32> -> vector<16x32xf32>
    %c0_3 = arith.constant 0 : index
    %c0_4 = arith.constant 0 : index
    %3 = vector.load %arg3[%c0_3, %c0_4] : memref<1x32xf32, #tpu.memory_space<vmem>>, vector<1x32xf32>
    %4 = vector.broadcast %3 : vector<1x32xf32> to vector<16x32xf32>
    %5 = arith.addf %2, %4 : vector<16x32xf32>
    %cst_5 = arith.constant 0.000000e+00 : f32
    %6 = vector.broadcast %cst_5 : f32 to vector<16x32xf32>
    %7 = arith.maximumf %5, %6 : vector<16x32xf32>
    %c0_6 = arith.constant 0 : index
    %c0_7 = arith.constant 0 : index
    %8 = vector.load %arg4[%c0_6, %c0_7] : memref<16x32xf32, #tpu.memory_space<vmem>>, vector<16x32xf32>
    tpu.vector_store %arg4[%c0_6, %c0_7], %7 {strides = array<i32>} : memref<16x32xf32, #tpu.memory_space<vmem>>, vector<16x32xf32>,
    return
  }
  func.func @transform_0(%arg0: i32) -> (i32, i32) {
    %c0_i32 = arith.constant 0 : i32
    %c0_i32_0 = arith.constant 0 : i32
    return %arg0, %c0_i32 : i32, i32
  }
  func.func @transform_1(%arg0: i32) -> (i32, i32) {
    %c0_i32 = arith.constant 0 : i32
    %c0_i32_0 = arith.constant 0 : i32
    %c0_i32_1 = arith.constant 0 : i32
    return %c0_i32, %c0_i32_0 : i32, i32
  }
  func.func @transform_2(%arg0: i32) -> (i32, i32) {
    %c0_i32 = arith.constant 0 : i32
    %c0_i32_0 = arith.constant 0 : i32
    %c0_i32_1 = arith.constant 0 : i32
    return %c0_i32, %c0_i32_0 : i32, i32
  }
  func.func @transform_3(%arg0: i32) -> (i32, i32) {
    %c0_i32 = arith.constant 0 : i32
    %c0_i32_0 = arith.constant 0 : i32
    return %arg0, %c0_i32 : i32, i32
  }
}

</mosaic_0001>

<bundles_post_ra>
// kernel: tpu_custom_call.1
= control target key start
LH: loop header
LB: loop body
LE: loop exit
PB: predicated region body
PF: predicated region fallthrough
CT: control target
= control target key end

     0   :  { %8 = vsyncpa [#allocation3], 0  ;;  %s364_s0 = inlined_call_operand.hbm [shape: f32[16,32], index: 0, kind: input, shape index: {}]   ;;  %s365_s1 = inlined_call_operand.hbm [shape: f32[32,32], index: 1, kind: input, shape index: {}]   ;;  %s366_s2 = inlined_call_operand.vmem [shape: f32[1,32], index: 2, kind: input, shape index: {}]   ;;  %s367_s3 = inlined_call_operand.hbm [shape: f32[16,32], index: 3, kind: output, shape index: {}]  }
   0x1   :  { %9 = vsyncpa [#allocation6], 0 }
   0x2   :  { %10 = vsyncpa [#allocation4], 0  ;;  %s285_s12 = smov [#allocation2]   ;;  %s213_s16 = scalar_lea.hbm %s364_s0, 256 }
   0x3   :  { %s16_s13 = sshll.u32 %s285_s12, 4  ;;  %p214_p0 = scmp.ne.s32.totalorder %s364_s0, %s213_s16  ;;  %s17_s13 = int_to_ptr.vmem [resolvable:$true] %s16_s13 }
   0x4   :  { %p217_p1 = scmp.lt.u32.totalorder %s213_s16, %s364_s0 }
   0x6   :  { %p219_p2 = pnand %p217_p1, %p214_p0 }
   0x8   :  { %222 = shalt.err (!%p219_p2)
}
   0x9   :  { %s223_s21 = scalar_lea.vmem %s17_s13, 256  ;;  %p228_p4 = scmp.lt.s32.totalorder %s17_s13, %s17_s13 }
   0xa   :  { %p224_p3 = scmp.ne.s32.totalorder %s17_s13, %s223_s21  ;;  %p229_p5 = scmp.lt.s32.totalorder %s223_s21, %s223_s21 }
   0xc   :  { %p230_p6 = por %p229_p5, %p228_p4 }
   0xe   :  { %p231_p7 = pnand %p230_p6, %p224_p3 }
  0x10   :  { %234 = shalt.err (!%p231_p7)
}
  0x11   :  { %s286_s22 = smov 128   ;;  %s287_s23 = smov 8  }
  0x12   :  { %22 = dma.hbm_to_vmem [thread:$0]  %s364_s0, 256, %s17_s13, [#allocation3], %s286_s22, %s286_s22, %s287_s23  }
  0x13   :  { %s288_s26 = smov [#allocation5]   ;;  %s235_s30 = scalar_lea.hbm %s365_s1, 512 }
  0x14   :  { %s28_s27 = sshll.u32 %s288_s26, 4  ;;  %p236_p8 = scmp.ne.s32.totalorder %s365_s1, %s235_s30  ;;  %s29_s27 = int_to_ptr.vmem [resolvable:$true] %s28_s27 }
  0x15   :  { %p239_p9 = scmp.lt.u32.totalorder %s235_s30, %s365_s1 }
  0x17   :  { %p241_p10 = pnand %p239_p9, %p236_p8 }
  0x19   :  { %244 = shalt.err (!%p241_p10)
}
  0x1a   :  { %s245_s8 = scalar_lea.vmem %s29_s27, 512  ;;  %p250_p12 = scmp.lt.s32.totalorder %s29_s27, %s29_s27 }
  0x1b   :  { %p246_p11 = scmp.ne.s32.totalorder %s29_s27, %s245_s8  ;;  %p251_p13 = scmp.lt.s32.totalorder %s245_s8, %s245_s8 }
  0x1d   :  { %p252_p0 = por %p251_p13, %p250_p12 }
  0x1f   :  { %p253_p1 = pnand %p252_p0, %p246_p11 }
  0x21   :  { %256 = shalt.err (!%p253_p1)
}
  0x22   :  { %34 = dma.hbm_to_vmem [thread:$0]  %s365_s1, 512, %s29_s27, [#allocation6], %s286_s22, %s286_s22, %s287_s23  }
  0x23   :  { %279 = dma.done.wait [#allocation3], 256  }
  0x24   :  { %280 = vsyncadd [#allocation3], 4294967040 }
  0x25   :  { %281 = dma.done.wait [#allocation6], 512  }
  0x26   :  { %282 = vsyncadd [#allocation6], 4294966784  ;;  %vm56_vm0 = vcmask 261120   ;;  %v45_v0 = vld [vmem:[#allocation5] sm:$0xff]  ;;  %v46_v1 = vld [vmem:[#allocation5 + $0x8] sm:$0xff]  ;;  %s289_s11 = smov [#allocation7]  }
  0x27   :  { %vm197_vm1 = vmpackc.low %vm56_vm0, %vm56_vm0  ;;  %v47_v2 = vld [vmem:[#allocation5 + $0x10] sm:$0xff]  ;;  %v196_v3 = vpack.c.bf16 %v46_v1, %v45_v0  ;;  %v48_v4 = vld [vmem:[#allocation5 + $0x18] sm:$0xff]  ;;  %s159_s12 = sshll.u32 %s289_s11, 4  ;;  %s160_s12 = int_to_ptr.vmem [resolvable:$true] %s159_s12 }
  0x28   :  { %v43_v5 = vld [vmem:[#allocation2] sm:$0xff]  ;;  %v202_v6 = vpack.c.bf16 %v48_v4, %v47_v2  ;;  %v44_v7 = vld [vmem:[#allocation2 + $0x8] sm:$0xff]  ;;  %s257_s13 = scalar_lea.vmem %s160_s12, 256  ;;  %p262_p3 = scmp.lt.s32.totalorder %s160_s12, %s160_s12 }
  0x29   :  { %193 = vmatprep.mubr.msk.f32.mxu0 %vm56_vm0, %v43_v5  ;;  %198 = vmatprep.subr.msk.bf16.mxu0 %vm197_vm1, %v196_v3  ;;  %v172_v8 = vld [vmem:[%s366_s2] ss:$0 sm:$0xff]  ;;  %p258_p2 = scmp.ne.s32.totalorder %s160_s12, %s257_s13  ;;  %p263_p4 = scmp.lt.s32.totalorder %s257_s13, %s257_s13 }
  0x2a   :  { %201 = vmatpush3.bf16.xpose.msk.msra.mxu0 %vm197_vm1, %v196_v3 }
  0x2b   :  { %204 = vmatprep.subr.msk.bf16.mxu0 %vm197_vm1, %v202_v6  ;;  %p264_p5 = por %p263_p4, %p262_p3 }
  0x2d   :  { %p265_p6 = pnand %p264_p5, %p258_p2 }
  0x32   :  { %207 = vmatpush3.bf16.xpose.msk.msra.mxu0 %vm197_vm1, %v202_v6 }
  0x39   :  { %194 = vmatmul.mubr.msk.f32.vlgmr.msra.gmra.mrb[0].mxu0 %vm56_vm0, %v44_v7 }
 0x10c   :  { %v195_v9 = vpop.f32.mrb[0].mxu0 }
 0x10d   :  { %v147_v10 = vadd.f32 %v195_v9, %v172_v8  ;;  %v141_v11 = vpop.f32.mrb[1].mxu0 }
 0x10e   :  { %v142_v12 = vadd.f32 %v172_v8, %v141_v11 }
 0x10f   :  { %v151_v13 = vmax.f32 %v147_v10, 0.0 }
 0x110   :  { %v150_v14 = vmax.f32 %v142_v12, 0.0 }
 0x111   :  { %153 = vst.msk [vmem:[#allocation7 + $0x8] sm:$0xff] %vm56_vm0, %v151_v13 }
 0x112   :  { %152 = vst.msk [vmem:[#allocation7] sm:$0xff] %vm56_vm0, %v150_v14 }
 0x113   :  { %268 = shalt.err (!%p265_p6)
}
 0x114   :  { %s269_s15 = scalar_lea.hbm %s367_s3, 256 }
 0x115   :  { %p270_p7 = scmp.ne.s32.totalorder %s367_s3, %s269_s15  ;;  %p273_p8 = scmp.lt.u32.totalorder %s269_s15, %s367_s3 }
 0x117   :  { %p275_p9 = pnand %p273_p8, %p270_p7 }
 0x119   :  { %278 = shalt.err (!%p275_p9)
}
 0x11a   :  { %165 = dma.vmem_to_hbm [thread:$0]  %s160_s12, 256, %s367_s3, [#allocation4], %s286_s22, %s286_s22, %s287_s23  }
 0x11b   :  { %283 = dma.done.wait [#allocation4], 256  }
 0x11c   :  { %284 = vsyncadd [#allocation4], 4294967040 }
 0x11d   :  { %169 = vsyncpa [#allocation3], 1 }
 0x11e   :  { %170 = vsyncpa [#allocation6], 1 }
 0x11f   :  { %171 = vsyncpa [#allocation4], 1 }

</bundles_post_ra>
